<compile_context>
chip_gen: v6e
topology: v6e:2x2x1
jax: 0.10.0
libtpu: 0.0.40
codegen_flags: <defaults>
</compile_context>

<pallas_src>
import functools

import jax
import jax.numpy as jnp
from jax.experimental import pallas as pl
from jax.experimental.pallas import tpu as pltpu

# Hyper-parameter constants from _default_hyper_parameters()
SIGMOID_CONSTANT = 100.0
TANH_CONSTANT = 100.0
MIN_CONSTANT = 10.0
MAX_CONSTANT = 10.0

# VMEM sizing: keep the double-buffered pipelined footprint under ~16 MiB and
# set the scoped-VMEM limit explicitly (32 MiB is safe on v5e/v6e/v7x).
_VMEM_PIPELINE_BUDGET = 16 * 1024 * 1024
_VMEM_LIMIT_BYTES = 32 * 1024 * 1024
_MAX_TILE_ROWS = 1024


def _row_tile(rows, cols, n_pipelined_arrays):
    """Largest row tile (multiple of 8, capped) whose double-buffered f32
    footprint across all pipelined arrays fits the VMEM budget.
    Blocks are always full-C wide (lane-dense output stores)."""
    bytes_per_row = cols * 4 * n_pipelined_arrays * 2  # f32, double-buffered
    tr = _VMEM_PIPELINE_BUDGET // max(bytes_per_row, 1)
    tr = max(8, (tr // 8) * 8)
    tr = min(tr, _MAX_TILE_ROWS)
    if rows <= tr:
        return rows
    return tr


# ----------------------------- elementwise kernels ------------------------- #
def _diffwhere_kernel(cond_ref, x1_ref, x2_ref, o_ref):
    # sigmoid(cond * c) * (x1 - x2) + x2
    sig = jax.nn.sigmoid(cond_ref[...] * SIGMOID_CONSTANT)
    o_ref[...] = sig * (x1_ref[...] - x2_ref[...]) + x2_ref[...]


def _tanhmask_kernel(x_ref, o_ref):
    # (1 + tanh(x * c)) / 2
    o_ref[...] = (1.0 + jnp.tanh(x_ref[...] * TANH_CONSTANT)) * 0.5


def _diffmin_kernel(x1_ref, x2_ref, o_ref):
    # -1/r * log(exp(-r*x1) + exp(-r*x2))  in max-shifted (overflow-safe) form:
    #   min(x1,x2) - (1/r) * log(1 + exp(-r*|x1-x2|))
    a = x1_ref[...]
    b = x2_ref[...]
    d = jnp.abs(a - b)
    o_ref[...] = jnp.minimum(a, b) - (1.0 / MIN_CONSTANT) * jnp.log(
        1.0 + jnp.exp(-MIN_CONSTANT * d)
    )


def _diffmax_kernel(x1_ref, x2_ref, o_ref):
    # 1/r * log(exp(r*x1) + exp(r*x2))  in max-shifted (overflow-safe) form:
    #   max(x1,x2) + (1/r) * log(1 + exp(-r*|x1-x2|))
    a = x1_ref[...]
    b = x2_ref[...]
    d = jnp.abs(a - b)
    o_ref[...] = jnp.maximum(a, b) + (1.0 / MAX_CONSTANT) * jnp.log(
        1.0 + jnp.exp(-MAX_CONSTANT * d)
    )


# ----------------------------- reduction kernel ---------------------------- #
def _streaming_lse_kernel(sgn, r, total_rows, x_ref, o_ref, m_ref, s_ref):
    """Streaming log-sum-exp over row tiles.

    Computes (sgn / r) * logsumexp(sgn * r * x) with a running max (m_ref) and
    running rescaled sum (s_ref), both (1,1) f32 VMEM scratch.
      sgn = +1 -> diffmax_v,  sgn = -1 -> diffmin_v.
    """
    @pl.when(pl.program_id(0) == 0)
    def _init():
        m_ref[...] = jnp.full_like(m_ref, -jnp.inf)
        s_ref[...] = jnp.zeros_like(s_ref)

    tr = x_ref.shape[0]
    xl = x_ref[...] * (sgn * r)

    # Mask rows past the true array extent (partial last block): -inf rows
    # contribute exp(-inf) = 0 to the sum and never win the max.
    row_ids = pl.program_id(0) * tr + jax.lax.broadcasted_iota(
        jnp.int32, xl.shape, 0
    )
    xl = jnp.where(row_ids < total_rows, xl, -jnp.inf)

    tile_m = jnp.max(xl, axis=None, keepdims=True)          # (1, 1)
    m_new = jnp.maximum(m_ref[...], tile_m)                  # (1, 1)
    scale = jnp.exp(m_ref[...] - m_new)                      # (1, 1)
    tile_s = jnp.sum(jnp.exp(xl - m_new), axis=None, keepdims=True)
    s_ref[...] = s_ref[...] * scale + tile_s
    m_ref[...] = m_new

    @pl.when(pl.program_id(0) == pl.num_programs(0) - 1)
    def _finalize():
        o_ref[...] = (sgn / r) * (m_ref[...] + jnp.log(s_ref[...]))


# ----------------------------- wrappers ------------------------------------ #
def _elementwise_call(kernel, *arrays):
    """Tile a 2-D elementwise kernel over row tiles; blocks are full-C wide."""
    shape = arrays[0].shape
    assert all(a.shape == shape for a in arrays)
    R, C = shape
    tr = _row_tile(R, C, len(arrays) + 1)  # inputs + output, double-buffered
    grid = (pl.cdiv(R, tr),)
    spec = pl.BlockSpec((tr, C), lambda i: (i, 0))
    return pl.pallas_call(
        kernel,
        out_shape=jax.ShapeDtypeStruct(shape, jnp.float32),
        grid_spec=pltpu.PrefetchScalarGridSpec(
            num_scalar_prefetch=0,
            grid=grid,
            in_specs=[spec] * len(arrays),
            out_specs=spec,
        ),
        compiler_params=pltpu.CompilerParams(
            dimension_semantics=("parallel",),
            vmem_limit_bytes=_VMEM_LIMIT_BYTES,
        ),
    )(*arrays)


def _reduction_call(sgn, r, x):
    """Tiled full-tensor streaming logsumexp; returns a scalar."""
    R, C = x.shape
    tr = _row_tile(R, C, 1)  # one pipelined input; output is a resident (1,1)
    grid = (pl.cdiv(R, tr),)
    kernel = functools.partial(_streaming_lse_kernel, sgn, r, R)
    out = pl.pallas_call(
        kernel,
        out_shape=jax.ShapeDtypeStruct((1, 1), jnp.float32),
        grid_spec=pltpu.PrefetchScalarGridSpec(
            num_scalar_prefetch=0,
            grid=grid,
            in_specs=[pl.BlockSpec((tr, C), lambda i: (i, 0))],
            out_specs=pl.BlockSpec((1, 1), lambda i: (0, 0)),
            scratch_shapes=[
                pltpu.VMEM((1, 1), jnp.float32),  # running max m
                pltpu.VMEM((1, 1), jnp.float32),  # running sum s
            ],
        ),
        compiler_params=pltpu.CompilerParams(
            dimension_semantics=("arbitrary",),
            vmem_limit_bytes=_VMEM_LIMIT_BYTES,
        ),
    )(x)
    return out[0, 0]


@jax.jit
def diffwhere(condition, x1, x2):
    return _elementwise_call(_diffwhere_kernel, condition, x1, x2)


@jax.jit
def tanhmask(x):
    return _elementwise_call(_tanhmask_kernel, x)


@jax.jit
def diffmin(x1, x2):
    return _elementwise_call(_diffmin_kernel, x1, x2)


@jax.jit
def diffmax(x1, x2):
    return _elementwise_call(_diffmax_kernel, x1, x2)


@jax.jit
def diffmin_v(x):
    return _reduction_call(-1.0, MIN_CONSTANT, x)


@jax.jit
def diffmax_v(x):
    return _reduction_call(1.0, MAX_CONSTANT, x)


# ----------------------------- reference (pure JAX) ------------------------ #
def _ref_diffwhere(c, x1, x2):
    return jax.nn.sigmoid(c * SIGMOID_CONSTANT) * (x1 - x2) + x2


def _ref_tanhmask(x):
    return (1.0 + jnp.tanh(x * TANH_CONSTANT)) / 2.0


def _ref_diffmin(x1, x2):
    return (-1.0 / MIN_CONSTANT) * jnp.log(
        jnp.exp(-MIN_CONSTANT * x1) + jnp.exp(-MIN_CONSTANT * x2)
    )


def _ref_diffmax(x1, x2):
    return (1.0 / MAX_CONSTANT) * jnp.log(
        jnp.exp(MAX_CONSTANT * x1) + jnp.exp(MAX_CONSTANT * x2)
    )


def _ref_diffmin_v(x):
    return (-1.0 / MIN_CONSTANT) * jnp.log(jnp.sum(jnp.exp(-MIN_CONSTANT * x)))


def _ref_diffmax_v(x):
    return (1.0 / MAX_CONSTANT) * jnp.log(jnp.sum(jnp.exp(MAX_CONSTANT * x)))


# ----------------------------- main ---------------------------------------- #
if __name__ == "__main__":
    key = jax.random.PRNGKey(0)

    def make_inputs(k, R, C):
        k1, k2, k3 = jax.random.split(k, 3)
        # Small magnitudes keep exp(r*x) well-conditioned in the naive f64->f32
        # reference (the kernels themselves are overflow-safe).
        cond = jax.random.normal(k1, (R, C), dtype=jnp.float32) * 0.05
        x1 = jax.random.normal(k2, (R, C), dtype=jnp.float32) * 0.5
        x2 = jax.random.normal(k3, (R, C), dtype=jnp.float32) * 0.5
        return cond, x1, x2

    # (64, 256): small demo, single grid step.
    # (2048, 256): exercises multi-step row tiling + streaming reduction.
    shapes = [(64, 256), (2048, 256)]
    for idx, (R, C) in enumerate(shapes):
        cond, x1, x2 = make_inputs(jax.random.fold_in(key, idx), R, C)
        checks = {
            "diffwhere": (diffwhere(cond, x1, x2), _ref_diffwhere(cond, x1, x2)),
            "tanhmask": (tanhmask(x1), _ref_tanhmask(x1)),
            "diffmin": (diffmin(x1, x2), _ref_diffmin(x1, x2)),
            "diffmax": (diffmax(x1, x2), _ref_diffmax(x1, x2)),
            "diffmin_v": (diffmin_v(x1), _ref_diffmin_v(x1)),
            "diffmax_v": (diffmax_v(x1), _ref_diffmax_v(x1)),
        }
        for name, (got, ref) in checks.items():
            got = jax.block_until_ready(got)
            if not jnp.allclose(got, ref, rtol=1e-4, atol=1e-4):
                raise AssertionError(f"mismatch in {name} at shape {(R, C)}")

    print("KERNEL_OK")
</pallas_src>

<mosaic_0001>
module attributes {stable_mosaic.version = 11 : i64} {
  func.func @_diffwhere_kernel(%arg0: i32, %arg1: memref<64x256xf32, #tpu.memory_space<vmem>>, %arg2: memref<64x256xf32, #tpu.memory_space<vmem>>, %arg3: memref<64x256xf32, #tpu.memory_space<vmem>>, %arg4: memref<64x256xf32, #tpu.memory_space<vmem>>) attributes {dimension_semantics = [#tpu.dimension_semantics<parallel>], iteration_bounds = array<i64: 1>, scalar_prefetch = 0 : i64, scratch_operands = 0 : i64, tpu.core_type = #tpu.core_type<tc>, window_params = [{transform_indices = @transform_0, window_bounds = array<i64: 64, 256>}, {transform_indices = @transform_1, window_bounds = array<i64: 64, 256>}, {transform_indices = @transform_2, window_bounds = array<i64: 64, 256>}, {transform_indices = @transform_3, window_bounds = array<i64: 64, 256>}]} {
    %c0 = arith.constant 0 : index
    %c0_0 = arith.constant 0 : index
    %0 = vector.load %arg1[%c0, %c0_0] : memref<64x256xf32, #tpu.memory_space<vmem>>, vector<64x256xf32>
    %cst = arith.constant 1.000000e+02 : f32
    %1 = vector.broadcast %cst : f32 to vector<64x256xf32>
    %2 = arith.mulf %0, %1 : vector<64x256xf32>
    %3 = arith.negf %2 : vector<64x256xf32>
    %4 = math.exp %3 : vector<64x256xf32>
    %cst_1 = arith.constant 1.000000e+00 : f32
    %5 = vector.broadcast %cst_1 : f32 to vector<64x256xf32>
    %6 = arith.addf %5, %4 : vector<64x256xf32>
    %7 = arith.divf %5, %6 : vector<64x256xf32>
    %c0_2 = arith.constant 0 : index
    %c0_3 = arith.constant 0 : index
    %8 = vector.load %arg2[%c0_2, %c0_3] : memref<64x256xf32, #tpu.memory_space<vmem>>, vector<64x256xf32>
    %c0_4 = arith.constant 0 : index
    %c0_5 = arith.constant 0 : index
    %9 = vector.load %arg3[%c0_4, %c0_5] : memref<64x256xf32, #tpu.memory_space<vmem>>, vector<64x256xf32>
    %10 = arith.subf %8, %9 : vector<64x256xf32>
    %11 = arith.mulf %7, %10 : vector<64x256xf32>
    %c0_6 = arith.constant 0 : index
    %c0_7 = arith.constant 0 : index
    %12 = vector.load %arg3[%c0_6, %c0_7] : memref<64x256xf32, #tpu.memory_space<vmem>>, vector<64x256xf32>
    %13 = arith.addf %11, %12 : vector<64x256xf32>
    %c0_8 = arith.constant 0 : index
    %c0_9 = arith.constant 0 : index
    %14 = vector.load %arg4[%c0_8, %c0_9] : memref<64x256xf32, #tpu.memory_space<vmem>>, vector<64x256xf32>
    tpu.vector_store %arg4[%c0_8, %c0_9], %13 {strides = array<i32>} : memref<64x256xf32, #tpu.memory_space<vmem>>, vector<64x256xf32>,
    return
  }
  func.func @transform_0(%arg0: i32) -> (i32, i32) {
    %c0_i32 = arith.constant 0 : i32
    %c0_i32_0 = arith.constant 0 : i32
    return %arg0, %c0_i32 : i32, i32
  }
  func.func @transform_1(%arg0: i32) -> (i32, i32) {
    %c0_i32 = arith.constant 0 : i32
    %c0_i32_0 = arith.constant 0 : i32
    return %arg0, %c0_i32 : i32, i32
  }
  func.func @transform_2(%arg0: i32) -> (i32, i32) {
    %c0_i32 = arith.constant 0 : i32
    %c0_i32_0 = arith.constant 0 : i32
    return %arg0, %c0_i32 : i32, i32
  }
  func.func @transform_3(%arg0: i32) -> (i32, i32) {
    %c0_i32 = arith.constant 0 : i32
    %c0_i32_0 = arith.constant 0 : i32
    return %arg0, %c0_i32 : i32, i32
  }
}

</mosaic_0001>

<bundles_post_ra>
// kernel: diffwhere.1
= control target key start
LH: loop header
LB: loop body
LE: loop exit
PB: predicated region body
PF: predicated region fallthrough
CT: control target
= control target key end

     0   :  { %8 = vsyncpa [#allocation3], 0  ;;  %s520_s0 = inlined_call_operand.hbm [shape: f32[64,256], index: 0, kind: input, shape index: {}]   ;;  %s521_s1 = inlined_call_operand.hbm [shape: f32[64,256], index: 1, kind: input, shape index: {}]   ;;  %s522_s2 = inlined_call_operand.hbm [shape: f32[64,256], index: 2, kind: input, shape index: {}]   ;;  %s523_s3 = inlined_call_operand.hbm [shape: f32[64,256], index: 3, kind: output, shape index: {}]  }
   0x1   :  { %9 = vsyncpa [#allocation6], 0 }
   0x2   :  { %10 = vsyncpa [#allocation4], 0  ;;  %s470_s12 = smov [#allocation5]   ;;  %s471_s14 = smov [#allocation2]  }
   0x3   :  { %s28_s13 = sshll.u32 %s470_s12, 4  ;;  %s16_s15 = sshll.u32 %s471_s14, 4  ;;  %s29_s13 = int_to_ptr.vmem [resolvable:$true] %s28_s13  ;;  %s17_s15 = int_to_ptr.vmem [resolvable:$true] %s16_s15 }
   0x4   :  { %s392_s16 = scalar_lea.vmem %s29_s13, 2048  ;;  %p397_p1 = scmp.lt.s32.totalorder %s29_s13, %s29_s13 }
   0x5   :  { %p393_p0 = scmp.ne.s32.totalorder %s29_s13, %s392_s16  ;;  %p398_p2 = scmp.lt.s32.totalorder %s392_s16, %s392_s16 }
   0x7   :  { %p399_p3 = por %p398_p2, %p397_p1 }
   0x9   :  { %p400_p4 = pnand %p399_p3, %p393_p0 }
   0xb   :  { %403 = shalt.err (!%p400_p4)
}
   0xc   :  { %s472_s17 = smov 256   ;;  %s473_s18 = smov 16  }
   0xd   :  { %34 = dma.hbm_to_vmem [thread:$0]  %s521_s1, 2048, %s29_s13, [#allocation6], %s472_s17, %s472_s17, %s473_s18  }
   0xe   :  { %s412_s21 = scalar_lea.vmem %s17_s15, 2048  ;;  %p417_p6 = scmp.lt.s32.totalorder %s17_s15, %s17_s15 }
   0xf   :  { %p413_p5 = scmp.ne.s32.totalorder %s17_s15, %s412_s21  ;;  %p418_p7 = scmp.lt.s32.totalorder %s412_s21, %s412_s21 }
  0x11   :  { %p419_p8 = por %p418_p7, %p417_p6 }
  0x13   :  { %p420_p9 = pnand %p419_p8, %p413_p5 }
  0x15   :  { %423 = shalt.err (!%p420_p9)
}
  0x16   :  { %22 = dma.hbm_to_vmem [thread:$0]  %s520_s0, 2048, %s17_s15, [#allocation3], %s472_s17, %s472_s17, %s473_s18  }
  0x17   :  { %s474_s24 = smov [#allocation7]  }
  0x18   :  { %s40_s25 = sshll.u32 %s474_s24, 4  ;;  %s41_s25 = int_to_ptr.vmem [resolvable:$true] %s40_s25 }
  0x19   :  { %s432_s26 = scalar_lea.vmem %s41_s25, 2048  ;;  %p437_p11 = scmp.lt.s32.totalorder %s41_s25, %s41_s25 }
  0x1a   :  { %p433_p10 = scmp.ne.s32.totalorder %s41_s25, %s432_s26  ;;  %p438_p12 = scmp.lt.s32.totalorder %s432_s26, %s432_s26 }
  0x1c   :  { %p439_p13 = por %p438_p12, %p437_p11 }
  0x1e   :  { %p440_p0 = pnand %p439_p13, %p433_p10 }
  0x20   :  { %443 = shalt.err (!%p440_p0)
}
  0x21   :  { %46 = dma.hbm_to_vmem [thread:$0]  %s522_s2, 2048, %s41_s25, [#allocation6], %s472_s17, %s472_s17, %s473_s18  }
  0x22   :  { %464 = dma.done.wait [#allocation3], 2048  }
  0x23   :  { %465 = vsyncadd [#allocation3], 4294965248 }
  0x24   :  { %466 = dma.done.wait [#allocation6], 4096  }
  0x25   :  { %467 = vsyncadd [#allocation6], 4294963200  ;;  %v56_v0 = vld [vmem:[#allocation2] sm:$0xff]  ;;  %v57_v2 = vld [vmem:[#allocation2 + $0x8] sm:$0xff]  ;;  %s475_s0 = smov [#allocation8]  }
  0x26   :  { %v298_v1 = vmul.f32 -100.0, %v56_v0  ;;  %v299_v3 = vmul.f32 -100.0, %v57_v2  ;;  %v58_v4 = vld [vmem:[#allocation2 + $0x10] sm:$0xff]  ;;  %v59_v7 = vld [vmem:[#allocation2 + $0x18] sm:$0xff]  ;;  %v60_v10 = vld [vmem:[#allocation2 + $0x20] sm:$0xff]  ;;  %s285_s2 = sshll.u32 %s475_s0, 4  ;;  %s286_s2 = int_to_ptr.vmem [resolvable:$true] %s285_s2 }
  0x27   :  { %v300_v6 = vmul.f32 -100.0, %v58_v4  ;;  %v301_v9 = vmul.f32 -100.0, %v59_v7  ;;  %v302_v12 = vmul.f32 -100.0, %v60_v10  ;;  %v61_v13 = vld [vmem:[#allocation2 + $0x28] sm:$0xff]  ;;  %v62_v16 = vld [vmem:[#allocation2 + $0x30] sm:$0xff]  ;;  %v63_v19 = vld [vmem:[#allocation2 + $0x38] sm:$0xff]  ;;  %p449_p2 = scmp.lt.s32.totalorder %s286_s2, %s286_s2 }
  0x28   :  { %v104_v5 = vmul.f32 1.442695, %v298_v1  ;;  %v106_v8 = vmul.f32 1.442695, %v299_v3  ;;  %v303_v15 = vmul.f32 -100.0, %v61_v13  ;;  %v304_v18 = vmul.f32 -100.0, %v62_v16 }
  0x29   :  { %v108_v11 = vmul.f32 1.442695, %v300_v6  ;;  %v110_v14 = vmul.f32 1.442695, %v301_v9  ;;  %v112_v17 = vmul.f32 1.442695, %v302_v12 }
  0x2a   :  { %320 = vpow2.f32 %v104_v5  ;;  %v114_v20 = vmul.f32 1.442695, %v303_v15  ;;  %v305_v21 = vmul.f32 -100.0, %v63_v19  ;;  %v64_v22 = vld [vmem:[#allocation2 + $0x40] sm:$0xff]  ;;  %v116_v23 = vmul.f32 1.442695, %v304_v18 }
  0x2b   :  { %322 = vpow2.f32 %v106_v8  ;;  %v306_v24 = vmul.f32 -100.0, %v64_v22  ;;  %v65_v25 = vld [vmem:[#allocation2 + $0x48] sm:$0xff]  ;;  %v66_v28 = vld [vmem:[#allocation2 + $0x50] sm:$0xff]  ;;  %v67_v31 = vld [vmem:[#allocation2 + $0x58] sm:$0xff]  ;;  %s444_s28 = scalar_lea.vmem %s286_s2, 2048 }
  0x2c   :  { %324 = vpow2.f32 %v108_v11  ;;  %v118_v26 = vmul.f32 1.442695, %v305_v21  ;;  %v307_v27 = vmul.f32 -100.0, %v65_v25  ;;  %v308_v30 = vmul.f32 -100.0, %v66_v28  ;;  %v68_v34 = vld [vmem:[#allocation2 + $0x60] sm:$0xff]  ;;  %v69_v37 = vld [vmem:[#allocation2 + $0x68] sm:$0xff]  ;;  %p445_p1 = scmp.ne.s32.totalorder %s286_s2, %s444_s28  ;;  %p450_p3 = scmp.lt.s32.totalorder %s444_s28, %s444_s28 }
  0x2d   :  { %326 = vpow2.f32 %v110_v14  ;;  %v120_v29 = vmul.f32 1.442695, %v306_v24  ;;  %v309_v33 = vmul.f32 -100.0, %v67_v31  ;;  %v310_v36 = vmul.f32 -100.0, %v68_v34  ;;  %v70_v40 = vld [vmem:[#allocation2 + $0x70] sm:$0xff]  ;;  %v71_v43 = vld [vmem:[#allocation2 + $0x78] sm:$0xff] }
  0x2e   :  { %328 = vpow2.f32 %v112_v17  ;;  %v122_v32 = vmul.f32 1.442695, %v307_v27  ;;  %v124_v35 = vmul.f32 1.442695, %v308_v30  ;;  %v311_v39 = vmul.f32 -100.0, %v69_v37  ;;  %v184_v4 = vld [vmem:[#allocation5] sm:$0xff]  ;;  %p451_p4 = por %p450_p3, %p449_p2 }
  0x2f   :  { %330 = vpow2.f32 %v114_v20  ;;  %v126_v38 = vmul.f32 1.442695, %v309_v33  ;;  %v128_v41 = vmul.f32 1.442695, %v310_v36  ;;  %v312_v42 = vmul.f32 -100.0, %v70_v40  ;;  %v200_v5 = vld [vmem:[#allocation7] sm:$0xff] }
  0x30   :  { %332 = vpow2.f32 %v116_v23  ;;  %v130_v44 = vmul.f32 1.442695, %v311_v39  ;;  %v313_v45 = vmul.f32 -100.0, %v71_v43  ;;  %v185_v8 = vld [vmem:[#allocation5 + $0x8] sm:$0xff]  ;;  %v186_v12 = vld [vmem:[#allocation5 + $0x10] sm:$0xff]  ;;  %v216_v16 = vsub.f32 %v184_v4, %v200_v5  ;;  %v187_v17 = vld [vmem:[#allocation5 + $0x18] sm:$0xff]  ;;  %p452_p5 = pnand %p451_p4, %p445_p1 }
  0x31   :  { %334 = vpow2.f32 %v118_v26  ;;  %v132_v46 = vmul.f32 1.442695, %v312_v42  ;;  %v201_v9 = vld [vmem:[#allocation7 + $0x8] sm:$0xff]  ;;  %v202_v13 = vld [vmem:[#allocation7 + $0x10] sm:$0xff]  ;;  %v203_v18 = vld [vmem:[#allocation7 + $0x18] sm:$0xff] }
  0x32   :  { %336 = vpow2.f32 %v120_v29  ;;  %v134_v48 = vmul.f32 1.442695, %v313_v45  ;;  %v217_v21 = vsub.f32 %v185_v8, %v201_v9  ;;  %v188_v22 = vld [vmem:[#allocation5 + $0x20] sm:$0xff]  ;;  %v218_v26 = vsub.f32 %v186_v12, %v202_v13  ;;  %v189_v27 = vld [vmem:[#allocation5 + $0x28] sm:$0xff]  ;;  %v206_v33 = vld [vmem:[#allocation7 + $0x30] sm:$0xff] }
  0x33   :  { %338 = vpow2.f32 %v122_v32  ;;  %v204_v23 = vld [vmem:[#allocation7 + $0x20] sm:$0xff]  ;;  %v205_v28 = vld [vmem:[#allocation7 + $0x28] sm:$0xff]  ;;  %v219_v31 = vsub.f32 %v187_v17, %v203_v18  ;;  %v190_v32 = vld [vmem:[#allocation5 + $0x30] sm:$0xff] }
  0x34   :  { %340 = vpow2.f32 %v124_v35  ;;  %v220_v37 = vsub.f32 %v188_v22, %v204_v23  ;;  %v207_v39 = vld [vmem:[#allocation7 + $0x38] sm:$0xff]  ;;  %v221_v42 = vsub.f32 %v189_v27, %v205_v28  ;;  %v192_v43 = vld [vmem:[#allocation5 + $0x40] sm:$0xff] }
  0x35   :  { %342 = vpow2.f32 %v126_v38  ;;  %v191_v38 = vld [vmem:[#allocation5 + $0x38] sm:$0xff]  ;;  %v212_v4 = vld [vmem:[#allocation7 + $0x60] sm:$0xff] }
  0x36   :  { %344 = vpow2.f32 %v128_v41  ;;  %v215_v22 = vld [vmem:[#allocation7 + $0x78] sm:$0xff] }
  0x37   :  { %v321_v47 = vpop.eup %320  ;;  %346 = vpow2.f32 %v130_v44  ;;  %v208_v44 = vld [vmem:[#allocation7 + $0x40] sm:$0xff] }
  0x38   :  { %v323_v49 = vpop.eup %322  ;;  %v136_v50 = vadd.f32 1.0, %v321_v47  ;;  %348 = vpow2.f32 %v132_v46 }
  0x39   :  { %v325_v51 = vpop.eup %324  ;;  %v137_v52 = vadd.f32 1.0, %v323_v49  ;;  %350 = vpow2.f32 %v134_v48  ;;  %v222_v48 = vsub.f32 %v190_v32, %v206_v33  ;;  %v193_v49 = vld [vmem:[#allocation5 + $0x48] sm:$0xff] }
  0x3a   :  { %v327_v53 = vpop.eup %326  ;;  %352 = vrcp.f32 %v136_v50  ;;  %v138_v54 = vadd.f32 1.0, %v325_v51  ;;  %v209_v50 = vld [vmem:[#allocation7 + $0x48] sm:$0xff] }
  0x3b   :  { %v329_v55 = vpop.eup %328  ;;  %354 = vrcp.f32 %v137_v52  ;;  %v139_v56 = vadd.f32 1.0, %v327_v53 }
  0x3c   :  { %v331_v57 = vpop.eup %330  ;;  %356 = vrcp.f32 %v138_v54  ;;  %v140_v58 = vadd.f32 1.0, %v329_v55  ;;  %v223_v54 = vsub.f32 %v191_v38, %v207_v39  ;;  %v194_v55 = vld [vmem:[#allocation5 + $0x50] sm:$0xff] }
  0x3d   :  { %v333_v59 = vpop.eup %332  ;;  %358 = vrcp.f32 %v139_v56  ;;  %v141_v60 = vadd.f32 1.0, %v331_v57  ;;  %v210_v56 = vld [vmem:[#allocation7 + $0x50] sm:$0xff] }
  0x3e   :  { %v335_v61 = vpop.eup %334  ;;  %360 = vrcp.f32 %v140_v58  ;;  %v142_v62 = vadd.f32 1.0, %v333_v59  ;;  %v226_v8 = vsub.f32 %v194_v55, %v210_v56 }
  0x3f   :  { %v337_v63 = vpop.eup %336  ;;  %362 = vrcp.f32 %v141_v60  ;;  %v143_v0 = vadd.f32 1.0, %v335_v61  ;;  %v224_v60 = vsub.f32 %v192_v43, %v208_v44  ;;  %v195_v61 = vld [vmem:[#allocation5 + $0x58] sm:$0xff] }
  0x40   :  { %v339_v1 = vpop.eup %338  ;;  %364 = vrcp.f32 %v142_v62  ;;  %v144_v2 = vadd.f32 1.0, %v337_v63  ;;  %v211_v62 = vld [vmem:[#allocation7 + $0x58] sm:$0xff] }
  0x41   :  { %v341_v3 = vpop.eup %340  ;;  %366 = vrcp.f32 %v143_v0  ;;  %v145_v6 = vadd.f32 1.0, %v339_v1 }
  0x42   :  { %v343_v7 = vpop.eup %342  ;;  %368 = vrcp.f32 %v144_v2  ;;  %v146_v10 = vadd.f32 1.0, %v341_v3  ;;  %v225_v2 = vsub.f32 %v193_v49, %v209_v50  ;;  %v196_v3 = vld [vmem:[#allocation5 + $0x60] sm:$0xff] }
  0x43   :  { %v345_v11 = vpop.eup %344  ;;  %370 = vrcp.f32 %v145_v6  ;;  %v147_v14 = vadd.f32 1.0, %v343_v7 }
  0x44   :  { %v347_v15 = vpop.eup %346  ;;  %372 = vrcp.f32 %v146_v10  ;;  %v148_v19 = vadd.f32 1.0, %v345_v11  ;;  %v213_v10 = vld [vmem:[#allocation7 + $0x68] sm:$0xff] }
  0x45   :  { %v349_v20 = vpop.eup %348  ;;  %374 = vrcp.f32 %v147_v14  ;;  %v149_v24 = vadd.f32 1.0, %v347_v15  ;;  %v227_v14 = vsub.f32 %v195_v61, %v211_v62  ;;  %v198_v15 = vld [vmem:[#allocation5 + $0x70] sm:$0xff] }
  0x46   :  { %v351_v25 = vpop.eup %350  ;;  %376 = vrcp.f32 %v148_v19  ;;  %v150_v29 = vadd.f32 1.0, %v349_v20  ;;  %v228_v20 = vsub.f32 %v196_v3, %v212_v4 }
  0x47   :  { %v353_v30 = vpop.eup %352  ;;  %378 = vrcp.f32 %v149_v24  ;;  %v151_v34 = vadd.f32 1.0, %v351_v25 }
  0x48   :  { %v355_v35 = vpop.eup %354  ;;  %v232_v36 = vmul.f32 %v353_v30, %v216_v16  ;;  %380 = vrcp.f32 %v150_v29  ;;  %v214_v16 = vld [vmem:[#allocation7 + $0x70] sm:$0xff] }
  0x49   :  { %v357_v40 = vpop.eup %356  ;;  %v233_v41 = vmul.f32 %v355_v35, %v217_v21  ;;  %382 = vrcp.f32 %v151_v34  ;;  %v199_v21 = vld [vmem:[#allocation5 + $0x78] sm:$0xff]  ;;  %v230_v30 = vsub.f32 %v198_v15, %v214_v16 }
  0x4a   :  { %v359_v45 = vpop.eup %358  ;;  %v248_v46 = vadd.f32 %v232_v36, %v200_v5  ;;  %v234_v47 = vmul.f32 %v357_v40, %v218_v26  ;;  %v231_v35 = vsub.f32 %v199_v21, %v215_v22 }
  0x4b   :  { %v361_v51 = vpop.eup %360  ;;  %v249_v52 = vadd.f32 %v233_v41, %v201_v9  ;;  %v235_v53 = vmul.f32 %v359_v45, %v219_v31  ;;  %v197_v9 = vld [vmem:[#allocation5 + $0x68] sm:$0xff] }
  0x4c   :  { %v363_v57 = vpop.eup %362  ;;  %264 = vst [vmem:[#allocation8] sm:$0xff] %v248_v46  ;;  %v250_v58 = vadd.f32 %v234_v47, %v202_v13  ;;  %v236_v59 = vmul.f32 %v361_v51, %v220_v37  ;;  %v229_v26 = vsub.f32 %v197_v9, %v213_v10 }
  0x4d   :  { %v365_v63 = vpop.eup %364  ;;  %265 = vst [vmem:[#allocation8 + $0x8] sm:$0xff] %v249_v52  ;;  %v251_v0 = vadd.f32 %v235_v53, %v203_v18  ;;  %v237_v1 = vmul.f32 %v363_v57, %v221_v42 }
  0x4e   :  { %v367_v5 = vpop.eup %366  ;;  %266 = vst [vmem:[#allocation8 + $0x10] sm:$0xff] %v250_v58  ;;  %v252_v6 = vadd.f32 %v236_v59, %v204_v23  ;;  %v238_v7 = vmul.f32 %v365_v63, %v222_v48 }
  0x4f   :  { %v369_v11 = vpop.eup %368  ;;  %267 = vst [vmem:[#allocation8 + $0x18] sm:$0xff] %v251_v0  ;;  %v253_v12 = vadd.f32 %v237_v1, %v205_v28  ;;  %v239_v13 = vmul.f32 %v367_v5, %v223_v54 }
  0x50   :  { %v371_v17 = vpop.eup %370  ;;  %268 = vst [vmem:[#allocation8 + $0x20] sm:$0xff] %v252_v6  ;;  %v254_v18 = vadd.f32 %v238_v7, %v206_v33  ;;  %v240_v19 = vmul.f32 %v369_v11, %v224_v60 }
  0x51   :  { %v373_v24 = vpop.eup %372  ;;  %269 = vst [vmem:[#allocation8 + $0x28] sm:$0xff] %v253_v12  ;;  %v255_v23 = vadd.f32 %v239_v13, %v207_v39  ;;  %v241_v25 = vmul.f32 %v371_v17, %v225_v2 }
  0x52   :  { %v375_v27 = vpop.eup %374  ;;  %270 = vst [vmem:[#allocation8 + $0x30] sm:$0xff] %v254_v18  ;;  %v256_v29 = vadd.f32 %v240_v19, %v208_v44  ;;  %v242_v28 = vmul.f32 %v373_v24, %v226_v8 }
  0x53   :  { %v377_v31 = vpop.eup %376  ;;  %271 = vst [vmem:[#allocation8 + $0x38] sm:$0xff] %v255_v23  ;;  %v257_v32 = vadd.f32 %v241_v25, %v209_v50  ;;  %v243_v34 = vmul.f32 %v375_v27, %v227_v14 }
  0x54   :  { %v379_v33 = vpop.eup %378  ;;  %272 = vst [vmem:[#allocation8 + $0x40] sm:$0xff] %v256_v29  ;;  %v258_v36 = vadd.f32 %v242_v28, %v210_v56  ;;  %v244_v37 = vmul.f32 %v377_v31, %v228_v20 }
  0x55   :  { %v381_v38 = vpop.eup %380  ;;  %273 = vst [vmem:[#allocation8 + $0x48] sm:$0xff] %v257_v32  ;;  %v259_v40 = vadd.f32 %v243_v34, %v211_v62  ;;  %v245_v39 = vmul.f32 %v379_v33, %v229_v26 }
  0x56   :  { %v383_v41 = vpop.eup %382  ;;  %274 = vst [vmem:[#allocation8 + $0x50] sm:$0xff] %v258_v36  ;;  %v260_v42 = vadd.f32 %v244_v37, %v212_v4  ;;  %v246_v43 = vmul.f32 %v381_v38, %v230_v30 }
  0x57   :  { %275 = vst [vmem:[#allocation8 + $0x58] sm:$0xff] %v259_v40  ;;  %v261_v44 = vadd.f32 %v245_v39, %v213_v10  ;;  %v247_v45 = vmul.f32 %v383_v41, %v231_v35 }
  0x58   :  { %276 = vst [vmem:[#allocation8 + $0x60] sm:$0xff] %v260_v42  ;;  %v262_v46 = vadd.f32 %v246_v43, %v214_v16 }
  0x59   :  { %277 = vst [vmem:[#allocation8 + $0x68] sm:$0xff] %v261_v44  ;;  %v263_v47 = vadd.f32 %v247_v45, %v215_v22 }
  0x5a   :  { %278 = vst [vmem:[#allocation8 + $0x70] sm:$0xff] %v262_v46 }
  0x5b   :  { %279 = vst [vmem:[#allocation8 + $0x78] sm:$0xff] %v263_v47 }
  0x5c   :  { %455 = shalt.err (!%p452_p5)
}
  0x5d   :  { %291 = dma.vmem_to_hbm [thread:$0]  %s286_s2, 2048, %s523_s3, [#allocation4], %s472_s17, %s472_s17, %s473_s18  }
  0x5e   :  { %468 = dma.done.wait [#allocation4], 2048  }
  0x5f   :  { %469 = vsyncadd [#allocation4], 4294965248 }
  0x60   :  { %295 = vsyncpa [#allocation3], 1 }
  0x61   :  { %296 = vsyncpa [#allocation6], 1 }
  0x62   :  { %297 = vsyncpa [#allocation4], 1 }

</bundles_post_ra>
